<compile_context>
chip_gen: v7x
topology: tpu7x:2x2x1
jax: 0.10.0
libtpu: 0.0.40
codegen_flags: <defaults>
</compile_context>

<pallas_src>
import functools

import jax
import jax.numpy as jnp
from jax import lax
from jax.experimental import pallas as pl
from jax.experimental.pallas import tpu as pltpu

# --- "variables_loader.Variables()" stand-ins (synthetic config) -------------
BLOCK_SIZE = 8      # block_size  (max sequence length; tril buffer size)
DROPOUT = 0.1       # dropout prob (inference => identity; see TODO below)
N_EMBD = 32         # n_embd
HEAD_SIZE = 16      # head_size

_MASK_NEG = -1e30   # large finite negative (never produces NaN for masked rows)


def _tensorcores_per_chip() -> int:
    """Best-effort TensorCores per chip: v7x has 2, v5e/v6e have 1."""
    try:
        kind = jax.devices()[0].device_kind.lower()
    except Exception:
        return 1
    return 2 if "v7" in kind else 1


def _choose_batch_blocks(B, T, C, H):
    """Split the batch across TensorCores only when each step has real work.

    Per-grid-step overhead is ~0.35 us; the split must also keep the flattened
    row tiles and the (bb, T*H) output block (8,128)-layout friendly.
    """
    n_tc = _tensorcores_per_chip()
    if n_tc < 2 or B % n_tc != 0:
        return 1
    bb = B // n_tc
    # Rough per-step FLOPs: QKV projection + two attention matmuls.
    flops_per_step = 2 * bb * T * (C * 3 * H + 2 * T * H)
    if flops_per_step < 2_000_000:      # far below a few microseconds of MXU work
        return 1
    if bb % 8 != 0:                     # keep output second-to-last dim 8-aligned
        return 1
    return n_tc


def make_fused_qkv_weight(w_key, w_query, w_value, n_embd):
    """One-time parameter transform: fuse K|Q|V and fold in the 1/sqrt(C) scale."""
    scale = float(n_embd) ** (-0.5)
    return jnp.concatenate([w_key, w_query * scale, w_value], axis=1)  # (C, 3H)


def _head_kernel(x_ref, wqkv_ref, o_ref, *, seq_len, head_size, matmul_dtype):
    # x_ref:    (bb*T, C)   flattened batch*seq rows (flatten done in the wrapper)
    # wqkv_ref: (C, 3H)     fused [key | query*(C^-0.5) | value] projection
    # o_ref:    (bb, T*H)   lane-dense output slab (wrapper reshapes to (bb, T, H))
    T = seq_len
    H = head_size
    rows, C = x_ref.shape
    bb = rows // T

    # Fused QKV projection over all bb*T rows: one MXU matmul on a contiguous
    # 2-D tile (no in-kernel merge of the sublane-tiled batch/seq axes).
    x2d = x_ref[...].astype(matmul_dtype)
    wqkv = wqkv_ref[...].astype(matmul_dtype)
    qkv = jnp.dot(x2d, wqkv, preferred_element_type=jnp.float32)     # (bb*T, 3H)

    # Split rows back into (bb, T, ·): T == sublane tile (8), so this is aligned.
    qkv = qkv.reshape(bb, T, 3 * H)
    k = qkv[:, :, 0 * H:1 * H]        # (bb, T, H)
    q = qkv[:, :, 1 * H:2 * H]        # (bb, T, H)  scale already folded in
    v = qkv[:, :, 2 * H:3 * H]        # (bb, T, H)

    # wei = q @ k^T — contract on the last dim of both operands (no explicit
    # transposed copy of k).
    wei = jnp.einsum('bqd,bkd->bqk', q.astype(matmul_dtype), k.astype(matmul_dtype),
                     preferred_element_type=jnp.float32)             # (bb, T, T)

    # Causal mask as one (T, T) additive bias built from 2-D iotas, broadcast
    # over the batch (no (bb, T, T) iota/compare intermediates).
    row = lax.broadcasted_iota(jnp.int32, (T, T), 0)
    col = lax.broadcasted_iota(jnp.int32, (T, T), 1)
    bias = jnp.where(col <= row, 0.0, _MASK_NEG).astype(jnp.float32)
    wei = wei + bias[None, :, :]

    # Numerically-stable softmax along the last axis (kept in f32 on all chips).
    wei = jnp.exp(wei - jnp.max(wei, axis=-1, keepdims=True))
    wei = wei * pl.reciprocal(jnp.sum(wei, axis=-1, keepdims=True), approx=True)

    # TODO(synk): nn.Dropout on `wei` is identity in eval mode; training-mode
    # dropout (pltpu.prng_seed + stateful_bernoulli) is intentionally omitted.

    out = jnp.einsum('bqk,bkd->bqd', wei.astype(matmul_dtype), v.astype(matmul_dtype),
                     preferred_element_type=jnp.float32)             # (bb, T, H)

    # Lane-dense store: fold (T, H) into the 128-lane axis so the vst is unmasked.
    o_ref[...] = out.reshape(bb, T * H).astype(o_ref.dtype)


def head_forward(x, w_qkv, head_size, *, batch_blocks=None,
                 matmul_dtype=jnp.float32):
    """x: (B, T, C) f32; w_qkv: (C, 3*head_size) fused weight -> (B, T, head_size).

    For realistic sizes on v6e/v7x pass matmul_dtype=jnp.bfloat16 (f32 accumulate);
    default f32 keeps exact semantics at these toy shapes.
    """
    B, T, C = x.shape
    H = head_size
    assert w_qkv.shape == (C, 3 * H)
    assert T <= BLOCK_SIZE, "sequence length exceeds block_size"

    if batch_blocks is None:
        batch_blocks = _choose_batch_blocks(B, T, C, H)
    while B % batch_blocks != 0:        # keep the batch tiling exact
        batch_blocks -= 1
    bb = B // batch_blocks

    # Wrapper-side flatten (free XLA layout plumbing): contiguous M for the QKV
    # matmul and no in-kernel merge of tiled axes.
    x2d = x.reshape(B * T, C)

    kernel = functools.partial(_head_kernel, seq_len=T, head_size=H,
                               matmul_dtype=matmul_dtype)
    out_flat = pl.pallas_call(
        kernel,
        out_shape=jax.ShapeDtypeStruct((B, T * H), jnp.float32),
        grid_spec=pltpu.PrefetchScalarGridSpec(
            num_scalar_prefetch=0,
            grid=(batch_blocks,),
            in_specs=[
                pl.BlockSpec((bb * T, C), lambda g: (g, 0)),
                pl.BlockSpec((C, 3 * H), lambda g: (0, 0)),
            ],
            out_specs=pl.BlockSpec((bb, T * H), lambda g: (g, 0)),
        ),
        compiler_params=pltpu.CompilerParams(
            dimension_semantics=("parallel",),
        ),
    )(x2d, w_qkv)

    # Wrapper-side un-flatten back to the module's (B, T, H) layout.
    return out_flat.reshape(B, T, H)


def head_reference(x, w_key, w_query, w_value):
    """Pure-JAX reference matching the PyTorch forward (eval mode)."""
    B, T, C = x.shape
    k = x @ w_key
    q = x @ w_query
    v = x @ w_value
    wei = (q @ jnp.swapaxes(k, -2, -1)) * (C ** (-0.5))
    tril = jnp.tril(jnp.ones((T, T), dtype=bool))
    wei = jnp.where(tril, wei, -jnp.inf)
    wei = jax.nn.softmax(wei, axis=-1)
    return wei @ v


if __name__ == "__main__":
    key = jax.random.PRNGKey(0)
    kx, kk, kq, kv = jax.random.split(key, 4)

    B, T, C, H = 2, BLOCK_SIZE, N_EMBD, HEAD_SIZE
    x = jax.random.normal(kx, (B, T, C), dtype=jnp.float32)

    # Deterministic "nn.Linear(n_embd, head_size, bias=False)" weights,
    # stored transposed as (C, H) so the kernel computes x @ W.
    init_scale = 1.0 / (C ** 0.5)
    w_key_p = jax.random.uniform(kk, (C, H), jnp.float32, -init_scale, init_scale)
    w_query_p = jax.random.uniform(kq, (C, H), jnp.float32, -init_scale, init_scale)
    w_value_p = jax.random.uniform(kv, (C, H), jnp.float32, -init_scale, init_scale)

    # One-time parameter transform: fuse projections + fold in attention scale.
    w_qkv = make_fused_qkv_weight(w_key_p, w_query_p, w_value_p, C)

    out = head_forward(x, w_qkv, H)
    jax.block_until_ready(out)

    ref = head_reference(x, w_key_p, w_query_p, w_value_p)
    assert out.shape == (B, T, H)
    assert jnp.allclose(out, ref, atol=2e-3, rtol=2e-3), "mismatch vs reference"

    print("KERNEL_OK")
</pallas_src>

<mosaic_0001>
module attributes {stable_mosaic.version = 11 : i64} {
  func.func @_head_kernel(%arg0: i32, %arg1: memref<16x32xf32, #tpu.memory_space<vmem>>, %arg2: memref<32x48xf32, #tpu.memory_space<vmem>>, %arg3: memref<2x128xf32, #tpu.memory_space<vmem>>) attributes {dimension_semantics = [#tpu.dimension_semantics<parallel>], iteration_bounds = array<i64: 1>, scalar_prefetch = 0 : i64, scratch_operands = 0 : i64, tpu.core_type = #tpu.core_type<tc>, window_params = [{transform_indices = @transform_0, window_bounds = array<i64: 16, 32>}, {pipeline_mode = #tpu.pipeline_mode<synchronous>, transform_indices = @transform_1, window_bounds = array<i64: 32, 48>}, {transform_indices = @transform_2, window_bounds = array<i64: 2, 128>}]} {
    %c0 = arith.constant 0 : index
    %c0_0 = arith.constant 0 : index
    %0 = vector.load %arg1[%c0, %c0_0] : memref<16x32xf32, #tpu.memory_space<vmem>>, vector<16x32xf32>
    %c0_1 = arith.constant 0 : index
    %c0_2 = arith.constant 0 : index
    %1 = vector.load %arg2[%c0_1, %c0_2] : memref<32x48xf32, #tpu.memory_space<vmem>>, vector<32x48xf32>
    %cst = arith.constant dense<0.000000e+00> : vector<16x48xf32>
    %2 = tpu.matmul %0, %1, %cst {dimension_numbers = #tpu.dot_dimension_numbers<[1], [0], [0], [1], [0, 0, 1, 1], [], []>} : vector<16x32xf32>, vector<32x48xf32>, vector<16x48xf32> -> vector<16x48xf32>
    %3 = vector.shape_cast %2 : vector<16x48xf32> to vector<2x8x48xf32>
    %4 = vector.extract_strided_slice %3 {offsets = [0, 0, 0], sizes = [2, 8, 16], strides = [1, 1, 1]} : vector<2x8x48xf32> to vector<2x8x16xf32>
    %5 = vector.extract_strided_slice %3 {offsets = [0, 0, 16], sizes = [2, 8, 16], strides = [1, 1, 1]} : vector<2x8x48xf32> to vector<2x8x16xf32>
    %6 = vector.extract_strided_slice %3 {offsets = [0, 0, 32], sizes = [2, 8, 16], strides = [1, 1, 1]} : vector<2x8x48xf32> to vector<2x8x16xf32>
    "tpu.trace_start"() <{level = 10 : i32, message = "bqd,bkd->bqk"}> : () -> ()
    %cst_3 = arith.constant dense<0.000000e+00> : vector<2x8x8xf32>
    %7 = tpu.matmul %5, %4, %cst_3 {dimension_numbers = #tpu.dot_dimension_numbers<[2], [2], [1], [1], [0, 0, 0, 1, 1, 1], [0], [0]>} : vector<2x8x16xf32>, vector<2x8x16xf32>, vector<2x8x8xf32> -> vector<2x8x8xf32>
    "tpu.trace_stop"() : () -> ()
    %8 = tpu.iota {dimensions = array<i32: 0>} : vector<8x8xi32>
    %9 = tpu.iota {dimensions = array<i32: 1>} : vector<8x8xi32>
    %10 = arith.cmpi sle, %9, %8 : vector<8x8xi32>
    %cst_4 = arith.constant 0.000000e+00 : f32
    %cst_5 = arith.constant -1.000000e+30 : f32
    %11 = vector.broadcast %cst_4 : f32 to vector<8x8xf32>
    %12 = vector.broadcast %cst_5 : f32 to vector<8x8xf32>
    %13 = arith.select %10, %11, %12 : vector<8x8xi1>, vector<8x8xf32>
    %14 = vector.shape_cast %13 : vector<8x8xf32> to vector<1x8x8xf32>
    %15 = vector.broadcast %14 : vector<1x8x8xf32> to vector<2x8x8xf32>
    %16 = arith.addf %7, %15 : vector<2x8x8xf32>
    %cst_6 = arith.constant dense<0xFF800000> : vector<2x8xf32>
    %17 = vector.multi_reduction <maximumf>, %16, %cst_6 [2] : vector<2x8x8xf32> to vector<2x8xf32>
    %18 = vector.shape_cast %17 : vector<2x8xf32> to vector<2x8x1xf32>
    %19 = vector.broadcast %18 : vector<2x8x1xf32> to vector<2x8x8xf32>
    %20 = arith.subf %16, %19 : vector<2x8x8xf32>
    %21 = math.exp %20 : vector<2x8x8xf32>
    %cst_7 = arith.constant dense<0.000000e+00> : vector<2x8xf32>
    %22 = vector.multi_reduction <add>, %21, %cst_7 [2] : vector<2x8x8xf32> to vector<2x8xf32>
    %23 = vector.shape_cast %22 : vector<2x8xf32> to vector<2x8x1xf32>
    %24 = tpu.reciprocal %23 {approx = true} : vector<2x8x1xf32> -> vector<2x8x1xf32>
    %25 = vector.broadcast %24 : vector<2x8x1xf32> to vector<2x8x8xf32>
    %26 = arith.mulf %21, %25 : vector<2x8x8xf32>
    "tpu.trace_start"() <{level = 10 : i32, message = "bqk,bkd->bqd"}> : () -> ()
    %cst_8 = arith.constant dense<0.000000e+00> : vector<2x8x16xf32>
    %27 = tpu.matmul %26, %6, %cst_8 {dimension_numbers = #tpu.dot_dimension_numbers<[2], [1], [1], [2], [0, 0, 0, 1, 1, 2], [0], [0]>} : vector<2x8x8xf32>, vector<2x8x16xf32>, vector<2x8x16xf32> -> vector<2x8x16xf32>
    "tpu.trace_stop"() : () -> ()
    %28 = vector.shape_cast %27 : vector<2x8x16xf32> to vector<2x128xf32>
    %c0_9 = arith.constant 0 : index
    %c0_10 = arith.constant 0 : index
    %29 = vector.load %arg3[%c0_9, %c0_10] : memref<2x128xf32, #tpu.memory_space<vmem>>, vector<2x128xf32>
    tpu.vector_store %arg3[%c0_9, %c0_10], %28 {strides = array<i32>} : memref<2x128xf32, #tpu.memory_space<vmem>>, vector<2x128xf32>,
    return
  }
  func.func @transform_0(%arg0: i32) -> (i32, i32) {
    %c0_i32 = arith.constant 0 : i32
    %c0_i32_0 = arith.constant 0 : i32
    return %arg0, %c0_i32 : i32, i32
  }
  func.func @transform_1(%arg0: i32) -> (i32, i32) {
    %c0_i32 = arith.constant 0 : i32
    %c0_i32_0 = arith.constant 0 : i32
    %c0_i32_1 = arith.constant 0 : i32
    return %c0_i32, %c0_i32_0 : i32, i32
  }
  func.func @transform_2(%arg0: i32) -> (i32, i32) {
    %c0_i32 = arith.constant 0 : i32
    %c0_i32_0 = arith.constant 0 : i32
    return %arg0, %c0_i32 : i32, i32
  }
}

</mosaic_0001>

<bundles_post_ra>
// kernel: tpu_custom_call.1
= control target key start
LH: loop header
LB: loop body
LE: loop exit
PB: predicated region body
PF: predicated region fallthrough
CT: control target
= control target key end

     0   :  { %7 = vsyncpa [#allocation3], 0  ;;  %s851_s0 = inlined_call_operand.hbm [shape: f32[16,32], index: 0, kind: input, shape index: {}]   ;;  %s852_s1 = inlined_call_operand.hbm [shape: f32[32,48], index: 1, kind: input, shape index: {}]   ;;  %s853_s2 = inlined_call_operand.hbm [shape: f32[2,128], index: 2, kind: output, shape index: {}]  }
   0x1   :  { %8 = vsyncpa [#allocation6], 0 }
   0x2   :  { %9 = vsyncpa [#allocation4], 0  ;;  %s745_s9 = smov [#allocation2]   ;;  %s673_s13 = scalar_lea.hbm %s851_s0, 256 }
   0x3   :  { %s15_s10 = sshll.u32 %s745_s9, 4  ;;  %p674_p0 = scmp.ne.s32.totalorder %s851_s0, %s673_s13  ;;  %s16_s10 = int_to_ptr.vmem [resolvable:$true] %s15_s10 }
   0x4   :  { %p677_p1 = scmp.lt.u32.totalorder %s673_s13, %s851_s0 }
   0x6   :  { %p679_p2 = pnand %p677_p1, %p674_p0 }
   0x8   :  { %682 = shalt.err (!%p679_p2)
}
   0x9   :  { %s683_s18 = scalar_lea.vmem %s16_s10, 256  ;;  %p688_p4 = scmp.lt.s32.totalorder %s16_s10, %s16_s10 }
   0xa   :  { %p684_p3 = scmp.ne.s32.totalorder %s16_s10, %s683_s18  ;;  %p689_p5 = scmp.lt.s32.totalorder %s683_s18, %s683_s18 }
   0xc   :  { %p690_p6 = por %p689_p5, %p688_p4 }
   0xe   :  { %p691_p7 = pnand %p690_p6, %p684_p3 }
  0x10   :  { %694 = shalt.err (!%p691_p7)
}
  0x11   :  { %s746_s19 = smov 128   ;;  %s747_s20 = smov 8  }
  0x12   :  { %21 = dma.hbm_to_vmem [thread:$0]  %s851_s0, 256, %s16_s10, [#allocation3], %s746_s19, %s746_s19, %s747_s20  }
  0x13   :  { %s748_s23 = smov [#allocation5]   ;;  %s695_s27 = scalar_lea.hbm %s852_s1, 512 }
  0x14   :  { %s27_s24 = sshll.u32 %s748_s23, 4  ;;  %p696_p8 = scmp.ne.s32.totalorder %s852_s1, %s695_s27  ;;  %s28_s24 = int_to_ptr.vmem [resolvable:$true] %s27_s24 }
  0x15   :  { %p699_p9 = scmp.lt.u32.totalorder %s695_s27, %s852_s1 }
  0x17   :  { %p701_p10 = pnand %p699_p9, %p696_p8 }
  0x19   :  { %704 = shalt.err (!%p701_p10)
}
  0x1a   :  { %s705_s4 = scalar_lea.vmem %s28_s24, 512  ;;  %p710_p12 = scmp.lt.s32.totalorder %s28_s24, %s28_s24 }
  0x1b   :  { %p706_p11 = scmp.ne.s32.totalorder %s28_s24, %s705_s4  ;;  %p711_p13 = scmp.lt.s32.totalorder %s705_s4, %s705_s4 }
  0x1d   :  { %p712_p0 = por %p711_p13, %p710_p12 }
  0x1f   :  { %p713_p1 = pnand %p712_p0, %p706_p11 }
  0x21   :  { %716 = shalt.err (!%p713_p1)
}
  0x22   :  { %33 = dma.hbm_to_vmem [thread:$0]  %s852_s1, 512, %s28_s24, [#allocation6], %s746_s19, %s746_s19, %s747_s20  }
  0x23   :  { %739 = dma.done.wait [#allocation3], 256  }
  0x24   :  { %740 = vsyncadd [#allocation3], 4294967040 }
  0x25   :  { %741 = dma.done.wait [#allocation6], 512  }
  0x26   :  { %742 = vsyncadd [#allocation6], 4294966784  ;;  %vm46_vm0 = vcmask 261120   ;;  %v42_v0 = vld [vmem:[#allocation5] sm:$0xff]  ;;  %v43_v1 = vld [vmem:[#allocation5 + $0x8] sm:$0xff]  ;;  %v749_v8 = vmov 0.0   ;;  %v128_v13 = vlaneseq }
  0x27   :  { %v44_v2 = vld [vmem:[#allocation5 + $0x10] sm:$0xff]  ;;  %v640_v3 = vpack.c.bf16 %v43_v1, %v42_v0  ;;  %v45_v4 = vld [vmem:[#allocation5 + $0x18] sm:$0xff]  ;;  %620 = vmatprep.subr.mxu1 %v749_v8  ;;  %vm750_vm1 = vmmov 0   ;;  %vm137_vm2 = vcmask 130048   ;;  %s751_s1 = smov 112   ;;  %vm289_vm4 = vcmask 64512  }
  0x28   :  { %v40_v5 = vld [vmem:[#allocation2] sm:$0xff]  ;;  %v644_v6 = vpack.c.bf16 %v45_v4, %v44_v2  ;;  %v41_v7 = vld [vmem:[#allocation2 + $0x8] sm:$0xff]  ;;  %622 = vmatprep.mubr.msk.f32.mxu1 %vm750_vm1, %v749_v8  ;;  %v129_v14 = vshrl.u32 %v128_v13, 7  ;;  %v131_v15 = vand.u32 127, %v128_v13  ;;  %v752_v16 = vmov -1e+30  }
  0x29   :  { %617 = vmatprep.mubr.msk.f32.mxu0 %vm46_vm0, %v40_v5  ;;  %641 = vmatprep.subr.bf16.mxu0 %v640_v3  ;;  %s753_s6 = smov 96   ;;  %v754_v44 = vmov 1983009808   ;;  %v755_v46 = vmov 1934713408   ;;  %s756_s7 = smov 32  }
  0x2a   :  { %643 = vmatpush3.bf16.msra.mxu0 %v640_v3  ;;  %vm132_vm3 = vcmp.le.s32.totalorder %v131_v15, %v129_v14  ;;  %v466_v45 = vunpack.c.l.s4 %v754_v44  ;;  %v497_v47 = vunpack.c.l.s4 %v755_v46  ;;  %s757_s8 = smov 48   ;;  %s758_s9 = smov 16   ;;  %vm560_vm5 = vcmask 392192  }
  0x2b   :  { %645 = vmatprep.subr.bf16.mxu0 %v644_v6  ;;  %v133_v17 = vsel %vm132_vm3, 0.0, %v752_v16  ;;  %s759_s10 = smov 64   ;;  %s760_s11 = smov 80   ;;  %vm562_vm6 = vcmask 523264   ;;  %vm564_vm7 = vcmask 654336   ;;  %vm566_vm8 = vcmask 785408  }
  0x2c   :  { %v467_v48 = vunpack.c.0.s8 %v466_v45  ;;  %v498_v50 = vunpack.c.0.s8 %v497_v47  ;;  %s761_s12 = smov [#allocation7]   ;;  %vm568_vm9 = vcmask 916480  }
  0x2d   :  { %s577_s13 = sshll.u32 %s761_s12, 4  ;;  %s578_s13 = int_to_ptr.vmem [resolvable:$true] %s577_s13 }
  0x2e   :  { %647 = vmatpush3.bf16.msra.mxu0 %v644_v6  ;;  %v470_v51 = vsub.s32 %v467_v48, %v129_v14  ;;  %v501_v55 = vsub.s32 %v498_v50, %v129_v14  ;;  %s717_s14 = scalar_lea.vmem %s578_s13, 32  ;;  %p722_p3 = scmp.lt.s32.totalorder %s578_s13, %s578_s13 }
  0x2f   :  { %630 = vmatprep.subr.mxu0 %v749_v8  ;;  %p718_p2 = scmp.ne.s32.totalorder %s578_s13, %s717_s14  ;;  %p723_p4 = scmp.lt.s32.totalorder %s717_s14, %s717_s14 }
  0x31   :  { %618 = vmatmul.mubr.msk.f32.vlgmr.msra.gmra.mrb[0].mxu0 %vm46_vm0, %v41_v7  ;;  %p724_p5 = por %p723_p4, %p722_p3 }
  0x32   :  { %632 = vmatprep.mubr.msk.f32.mxu0 %vm750_vm1, %v749_v8 }
  0x33   :  { %p725_p6 = pnand %p724_p5, %p718_p2 }
 0x104   :  { %v619_v9 = vpop.f32.mrb[0].mxu0 }
 0x105   :  { %v119_v10 = vpop.f32.mrb[1].mxu0 }
 0x106   :  { %135 = vrot.lane.b32.xlu0 %v119_v10, %s751_s1  ;;  %621 = vmatpush3.xpose.msk.msra.mxu1 %vm137_vm2, %v119_v10 }
 0x107   :  { %625 = vmatprep.subr.mxu1 %v749_v8 }
 0x10a   :  { %213 = vrot.lane.b32.xlu0 %v619_v9, %s751_s1 }
 0x178   :  { %v136_v11 = vpop.permute.xlu0 %135 }
 0x179   :  { %623 = vmatmul.mubr.msk.f32.vlgmr.msra.gmra.mrb[0].mxu1 %vm137_vm2, %v136_v11 }
 0x17a   :  { %626 = vmatpush3.xpose.msk.msra.mxu1 %vm137_vm2, %v619_v9  ;;  %627 = vmatprep.mubr.msk.f32.mxu1 %vm750_vm1, %v749_v8 }
 0x17b   :  { %635 = vmatprep.subr.mxu1 %v749_v8 }
 0x17c   :  { %v214_v12 = vpop.permute.xlu0 %213 }
 0x17d   :  { %628 = vmatmul.mubr.msk.f32.vlgmr.msra.gmra.mrb[2].mxu1 %vm137_vm2, %v214_v12 }
 0x17e   :  { %637 = vmatprep.mubr.msk.f32.mxu1 %vm750_vm1, %v749_v8 }
 0x24c   :  { %v208_v18 = vpop.f32.mrb[0].mxu1 }
 0x24d   :  { %v209_v19 = vadd.f32 %v208_v18, %v133_v17  ;;  %v624_v20 = vpop.f32.mrb[1].mxu1 }
 0x24f   :  { %v290_v21 = vsel %vm289_vm4, %v209_v19, -inf }
 0x250   :  { %291 = vmax.xlane.f32.xlu1 %v290_v21  ;;  %v285_v22 = vpop.f32.mrb[2].mxu1 }
 0x251   :  { %v286_v23 = vadd.f32 %v285_v22, %v133_v17  ;;  %v629_v24 = vpop.f32.mrb[3].mxu1 }
 0x253   :  { %v293_v25 = vsel %vm289_vm4, %v286_v23, -inf }
 0x254   :  { %294 = vmax.xlane.f32.xlu1 %v293_v25 }
 0x265   :  { %312 = vrot.lane.b32.xlu1 %v119_v10, %s753_s6 }
 0x2dd   :  { %v292_v26 = vpop.xlane.xlu1 %291 }
 0x2de   :  { %v296_v27 = vsub.f32 %v209_v19, %v292_v26 }
 0x2e0   :  { %v298_v28 = vmul.f32 1.442695, %v296_v27 }
 0x2e1   :  { %v295_v29 = vpop.xlane.xlu1 %294 }
 0x2e2   :  { %665 = vpow2.f32 %v298_v28  ;;  %v297_v30 = vsub.f32 %v286_v23, %v295_v29 }
 0x2e4   :  { %v300_v31 = vmul.f32 1.442695, %v297_v30 }
 0x2e5   :  { %v313_v32 = vpop.permute.xlu1 %312 }
 0x2e6   :  { %667 = vpow2.f32 %v300_v31  ;;  %631 = vmatpush3.msra.mxu0 %v313_v32 }
 0x2ec   :  { %v666_v33 = vpop.eup %665 }
 0x2ed   :  { %v302_v34 = vsel %vm289_vm4, %v666_v33, 0.0 }
 0x2ee   :  { %303 = vadd.xlane.f32.xlu0 %v302_v34 }
 0x2f0   :  { %v668_v35 = vpop.eup %667 }
 0x2f1   :  { %v305_v36 = vsel %vm289_vm4, %v668_v35, 0.0 }
 0x2f2   :  { %306 = vadd.xlane.f32.xlu1 %v305_v36 }
 0x303   :  { %388 = vrot.lane.b32.xlu1 %v619_v9, %s753_s6 }
 0x37b   :  { %v304_v37 = vpop.xlane.xlu0 %303 }
 0x37c   :  { %669 = vrcp.f32 %v304_v37 }
 0x37f   :  { %v307_v38 = vpop.xlane.xlu1 %306 }
 0x380   :  { %671 = vrcp.f32 %v307_v38 }
 0x383   :  { %v389_v39 = vpop.permute.xlu1 %388 }
 0x384   :  { %636 = vmatpush3.msra.mxu1 %v389_v39 }
 0x386   :  { %v670_v40 = vpop.eup %669 }
 0x387   :  { %v310_v41 = vmul.f32 %v670_v40, %v666_v33 }
 0x389   :  { %633 = vmatmul.mubr.msk.f32.vlgmr.msra.gmra.mrb[2].mxu0 %vm289_vm4, %v310_v41 }
 0x38a   :  { %v672_v42 = vpop.eup %671 }
 0x38b   :  { %v311_v43 = vmul.f32 %v672_v42, %v668_v35 }
 0x38d   :  { %638 = vmatmul.mubr.msk.f32.vlgmr.msra.gmra.mrb[4].mxu1 %vm289_vm4, %v311_v43 }
 0x45c   :  { %v384_v49 = vpop.f32.mrb[2].mxu0 }
 0x45d   :  { %v634_v52 = vpop.f32.mrb[3].mxu0  ;;  %v464_v53 = vcombine.high %v384_v49, %v749_v8  ;;  %v471_v56 = vrot.slane %v384_v49, %v470_v51 }
 0x45f   :  { %v478_v60 = vrot.slane %v464_v53, %v470_v51 }
 0x460   :  { %v460_v54 = vpop.f32.mrb[4].mxu1 }
 0x461   :  { %v479_v57 = vcombine.high %v460_v54, %v749_v8  ;;  %v486_v58 = vrot.slane %v460_v54, %v470_v51  ;;  %v639_v59 = vpop.f32.mrb[5].mxu1 }
 0x463   :  { %v493_v61 = vrot.slane %v479_v57, %v470_v51  ;;  %v494_v62 = vcombine.low %v471_v56, %v486_v58  ;;  %v495_v63 = vcombine.high %v471_v56, %v486_v58 }
 0x465   :  { %v502_v0 = vrot.slane %v494_v62, %v501_v55  ;;  %v510_v1 = vcombine.low %v478_v60, %v493_v61  ;;  %v511_v2 = vcombine.high %v478_v60, %v493_v61  ;;  %v509_v3 = vrot.slane %v495_v63, %v501_v55 }
 0x467   :  { %535 = vrot.lane.b32.xlu1 %v509_v3, %s756_s7  ;;  %v527_v4 = vcombine.high %v509_v3, %v749_v8  ;;  %v526_v5 = vcombine.high %v502_v0, %v749_v8  ;;  %v518_v6 = vrot.slane %v510_v1, %v501_v55  ;;  %v525_v7 = vrot.slane %v511_v2, %v501_v55 }
 0x469   :  { %539 = vrot.lane.b32.xlu0 %v527_v4, %s757_s8  ;;  %v528_v9 = vcombine.high %v518_v6, %v749_v8  ;;  %v529_v10 = vcombine.high %v525_v7, %v749_v8 }
 0x46b   :  { %531 = vrot.lane.b32.xlu1 %v526_v5, %s758_s9 }
 0x46f   :  { %543 = vrot.lane.b32.xlu1 %v518_v6, %s759_s10 }
 0x473   :  { %551 = vrot.lane.b32.xlu1 %v525_v7, %s753_s6 }
 0x477   :  { %547 = vrot.lane.b32.xlu1 %v528_v9, %s760_s11 }
 0x47b   :  { %555 = vrot.lane.b32.xlu1 %v529_v10, %s751_s1 }
 0x4d9   :  { %v536_v11 = vpop.permute.xlu1 %535 }
 0x4db   :  { %v540_v16 = vpop.permute.xlu0 %539 }
 0x4dd   :  { %v532_v12 = vpop.permute.xlu1 %531 }
 0x4de   :  { %v558_v13 = vsel %vm137_vm2, %v502_v0, %v532_v12 }
 0x4df   :  { %v559_v15 = vsel %vm46_vm0, %v558_v13, %v536_v11 }
 0x4e0   :  { %v561_v18 = vsel %vm560_vm5, %v559_v15, %v540_v16 }
 0x4e1   :  { %v544_v14 = vpop.permute.xlu1 %543 }
 0x4e2   :  { %v563_v19 = vsel %vm562_vm6, %v561_v18, %v544_v14 }
 0x4e5   :  { %v552_v17 = vpop.permute.xlu1 %551 }
 0x4e9   :  { %v548_v20 = vpop.permute.xlu1 %547 }
 0x4ea   :  { %v565_v21 = vsel %vm564_vm7, %v563_v19, %v548_v20 }
 0x4eb   :  { %v567_v8 = vsel %vm566_vm8, %v565_v21, %v552_v17 }
 0x4ed   :  { %v556_v22 = vpop.permute.xlu1 %555 }
 0x4ee   :  { %v569_v23 = vsel %vm568_vm9, %v567_v8, %v556_v22 }
 0x4ef   :  { %570 = vst [vmem:[#allocation7] sm:$0x3] %v569_v23 }
 0x4f0   :  { %728 = shalt.err (!%p725_p6)
}
 0x4f1   :  { %s729_s17 = scalar_lea.hbm %s853_s2, 32 }
 0x4f2   :  { %p730_p7 = scmp.ne.s32.totalorder %s853_s2, %s729_s17  ;;  %p733_p8 = scmp.lt.u32.totalorder %s729_s17, %s853_s2 }
 0x4f4   :  { %p735_p9 = pnand %p733_p8, %p730_p7 }
 0x4f6   :  { %738 = shalt.err (!%p735_p9)
}
 0x4f7   :  { %580 = dma.vmem_to_hbm [thread:$0]  %s578_s13, 32, %s853_s2, [#allocation4]  }
 0x4f8   :  { %743 = dma.done.wait [#allocation4], 32  }
 0x4f9   :  { %744 = vsyncadd [#allocation4], 4294967264 }
 0x4fa   :  { %584 = vsyncpa [#allocation3], 1 }
 0x4fb   :  { %585 = vsyncpa [#allocation6], 1 }
 0x4fc   :  { %586 = vsyncpa [#allocation4], 1 }

</bundles_post_ra>
